<compile_context>
chip_gen: v6e
topology: v6e:2x2x1
jax: 0.10.0
libtpu: 0.0.40
codegen_flags: <defaults>
</compile_context>

<pallas_src>
import functools
import math

import jax
import jax.numpy as jnp
from jax.experimental import pallas as pl
from jax.experimental.pallas import tpu as pltpu


def _round_up(n, m):
    return ((n + m - 1) // m) * m


# ---------------------------------------------------------------------------
# Kernel: one batch tile of the whole fused two-head network.
#   x_ref  : (TB, 28)  float32 (cast to compute dtype in-kernel)
#   w*_ref : narrow packed weights in compute dtype
#   b*_ref : (1, N)    float32 biases (zero padded), added to f32 accumulators
#   out_ref: (TB, 8)   float32; col 0 = d1, col 1 = d2
def single_model_kernel(x_ref, w1_ref, b1_ref, w2_ref, b2_ref,
                        w3_ref, b3_ref, w4_ref, b4_ref, out_ref):
    cdt = w1_ref.dtype  # compute dtype for MXU inputs

    # fc1 + relu (shared trunk of both branches)
    h = jnp.maximum(
        jnp.dot(x_ref[...].astype(cdt), w1_ref[...],
                preferred_element_type=jnp.float32) + b1_ref[...], 0.0)

    # fc2_1 | fc2_2 fused into one wide matmul
    a = jnp.maximum(
        jnp.dot(h.astype(cdt), w2_ref[...],
                preferred_element_type=jnp.float32) + b2_ref[...], 0.0)

    # block-diagonal fc3_1 / fc3_2
    a = jnp.maximum(
        jnp.dot(a.astype(cdt), w3_ref[...],
                preferred_element_type=jnp.float32) + b3_ref[...], 0.0)

    # block-diagonal fc4_1 / fc4_2 -> narrow (TB, 8) output
    out = (jnp.dot(a.astype(cdt), w4_ref[...],
                   preferred_element_type=jnp.float32) + b4_ref[...])
    out_ref[...] = out.astype(out_ref.dtype)


# ---------------------------------------------------------------------------
# Parameter construction (PyTorch nn.Linear-style init, stored as [in, out]).
def init_linear_params(key, in_features, out_features):
    kw, kb = jax.random.split(key)
    bound = 1.0 / math.sqrt(in_features)
    w = jax.random.uniform(kw, (in_features, out_features), jnp.float32,
                           minval=-bound, maxval=bound)
    b = jax.random.uniform(kb, (1, out_features), jnp.float32,
                           minval=-bound, maxval=bound)
    return w, b


def make_params(seed=0):
    keys = jax.random.split(jax.random.PRNGKey(seed), 7)
    return {
        "fc1":   init_linear_params(keys[0], 28, 30),
        "fc2_1": init_linear_params(keys[1], 30, 100),
        "fc2_2": init_linear_params(keys[2], 30, 100),
        "fc3_1": init_linear_params(keys[3], 100, 30),
        "fc3_2": init_linear_params(keys[4], 100, 30),
        "fc4_1": init_linear_params(keys[5], 30, 1),
        "fc4_2": init_linear_params(keys[6], 30, 1),
    }


def pack_params(params, compute_dtype=jnp.bfloat16):
    """One-time host-side packing into narrow fused weights. Call ONCE and
    reuse the returned tuple across forward calls."""
    w1, b1 = params["fc1"]
    w21, b21 = params["fc2_1"]
    w22, b22 = params["fc2_2"]
    w31, b31 = params["fc3_1"]
    w32, b32 = params["fc3_2"]
    w41, b41 = params["fc4_1"]
    w42, b42 = params["fc4_2"]

    W1 = jnp.zeros((28, 32), jnp.float32).at[:, :30].set(w1)
    B1 = jnp.zeros((1, 32), jnp.float32).at[:, :30].set(b1)

    W2 = (jnp.zeros((32, 256), jnp.float32)
          .at[:30, :100].set(w21)
          .at[:30, 128:228].set(w22))
    B2 = (jnp.zeros((1, 256), jnp.float32)
          .at[:, :100].set(b21)
          .at[:, 128:228].set(b22))

    W3 = (jnp.zeros((256, 64), jnp.float32)
          .at[:100, :30].set(w31)
          .at[128:228, 32:62].set(w32))
    B3 = (jnp.zeros((1, 64), jnp.float32)
          .at[:, :30].set(b31)
          .at[:, 32:62].set(b32))

    W4 = (jnp.zeros((64, 8), jnp.float32)
          .at[:30, 0:1].set(w41)
          .at[32:62, 1:2].set(w42))
    B4 = (jnp.zeros((1, 8), jnp.float32)
          .at[:, 0:1].set(b41)
          .at[:, 1:2].set(b42))

    cast = lambda w: w.astype(compute_dtype)
    # Biases stay f32 (added to the f32 accumulator on the VPU).
    return (cast(W1), B1, cast(W2), B2, cast(W3), B3, cast(W4), B4)


# ---------------------------------------------------------------------------
@functools.partial(jax.jit, static_argnames=("tb",))
def single_model_forward(x, packed, *, tb=2048):
    """Returns [d1, d2], each (B, 1) float32.

    packed: result of pack_params(params, compute_dtype) (pack once, reuse).
    tb:     batch tile rows. 2048 is safe on all generations; sweep toward
            4096-8192 on v5e/v6e (128 MiB VMEM), keep 2048-4096 on v7x
            (64 MiB VMEM) and ensure >=2 grid steps so both TCs get work.
    """
    W1, B1, W2, B2, W3, B3, W4, B4 = packed
    B = x.shape[0]
    TB = min(tb, _round_up(B, 8))           # tile rows (multiple of 8 sublanes)
    grid = (pl.cdiv(B, TB),)                # partial last tile handled by Pallas

    const = lambda shape: pl.BlockSpec(shape, lambda i: (0, 0))  # VMEM-resident

    out = pl.pallas_call(
        single_model_kernel,
        out_shape=jax.ShapeDtypeStruct((B, 8), jnp.float32),
        grid=grid,
        in_specs=[
            pl.BlockSpec((TB, 28), lambda i: (i, 0)),   # streaming x tile (f32)
            const((28, 32)),  const((1, 32)),           # W1 / b1
            const((32, 256)), const((1, 256)),          # W2 / b2 (fused heads)
            const((256, 64)), const((1, 64)),           # W3 / b3 (block-diag)
            const((64, 8)),   const((1, 8)),            # W4 / b4 (block-diag)
        ],
        out_specs=pl.BlockSpec((TB, 8), lambda i: (i, 0)),
        compiler_params=pltpu.CompilerParams(
            dimension_semantics=("parallel",),           # megacore on v7x
            vmem_limit_bytes=48 * 1024 * 1024),          # headroom for TB sweeps
    )(x, W1, B1, W2, B2, W3, B3, W4, B4)

    d1 = out[:, 0:1]
    d2 = out[:, 1:2]
    return [d1, d2]


# ---------------------------------------------------------------------------
def reference_forward(x, params):
    def lin(v, p):
        w, b = p
        return v @ w + b

    h = jax.nn.relu(lin(x, params["fc1"]))
    a1 = jax.nn.relu(lin(h, params["fc2_1"]))
    a1 = jax.nn.relu(lin(a1, params["fc3_1"]))
    d1 = lin(a1, params["fc4_1"])
    a2 = jax.nn.relu(lin(h, params["fc2_2"]))
    a2 = jax.nn.relu(lin(a2, params["fc3_2"]))
    d2 = lin(a2, params["fc4_2"])
    return [d1, d2]


if __name__ == "__main__":
    params = make_params(seed=0)

    # Pack once (hoisted out of the forward) for both compute dtypes.
    packed_f32 = pack_params(params, compute_dtype=jnp.float32)
    packed_bf16 = pack_params(params, compute_dtype=jnp.bfloat16)

    # Small shape consistent with the module (features = 28).
    B = 8
    x = jax.random.normal(jax.random.PRNGKey(0), (B, 28), jnp.float32)
    ref = reference_forward(x, params)

    # f32 compute path: tight numerical check of the fused / packed kernel.
    outs_f32 = jax.block_until_ready(single_model_forward(x, packed_f32))
    for o, r in zip(outs_f32, ref):
        assert o.shape == (B, 1), o.shape
        assert jnp.allclose(o, r, atol=1e-4, rtol=1e-4), \
            float(jnp.max(jnp.abs(o - r)))

    # Default bf16 compute path: loose check (f32 accumulation on the MXU).
    outs_bf16 = jax.block_until_ready(single_model_forward(x, packed_bf16))
    for o, r in zip(outs_bf16, ref):
        assert o.shape == (B, 1), o.shape
        assert float(jnp.max(jnp.abs(o - r))) < 5e-2, \
            float(jnp.max(jnp.abs(o - r)))

    # Larger batch with a small tile: multi-step pipelined grid with a masked
    # partial last tile (no host-side padding of x anymore).
    B_big = 300
    x_big = jax.random.normal(jax.random.PRNGKey(1), (B_big, 28), jnp.float32)
    ref_big = reference_forward(x_big, params)
    outs_big = jax.block_until_ready(
        single_model_forward(x_big, packed_f32, tb=128))
    for o, r in zip(outs_big, ref_big):
        assert o.shape == (B_big, 1), o.shape
        assert jnp.allclose(o, r, atol=1e-4, rtol=1e-4), \
            float(jnp.max(jnp.abs(o - r)))

    print("KERNEL_OK")
</pallas_src>

<mosaic_0001>
module attributes {stable_mosaic.version = 11 : i64} {
  func.func @single_model_kernel(%arg0: i32, %arg1: memref<8x28xf32, #tpu.memory_space<vmem>>, %arg2: memref<28x32xf32, #tpu.memory_space<vmem>>, %arg3: memref<1x32xf32, #tpu.memory_space<vmem>>, %arg4: memref<32x256xf32, #tpu.memory_space<vmem>>, %arg5: memref<1x256xf32, #tpu.memory_space<vmem>>, %arg6: memref<256x64xf32, #tpu.memory_space<vmem>>, %arg7: memref<1x64xf32, #tpu.memory_space<vmem>>, %arg8: memref<64x8xf32, #tpu.memory_space<vmem>>, %arg9: memref<1x8xf32, #tpu.memory_space<vmem>>, %arg10: memref<8x8xf32, #tpu.memory_space<vmem>>) attributes {dimension_semantics = [#tpu.dimension_semantics<parallel>], iteration_bounds = array<i64: 1>, scalar_prefetch = 0 : i64, scratch_operands = 0 : i64, tpu.core_type = #tpu.core_type<tc>, window_params = [{transform_indices = @transform_0, window_bounds = array<i64: 8, 28>}, {pipeline_mode = #tpu.pipeline_mode<synchronous>, transform_indices = @transform_1, window_bounds = array<i64: 28, 32>}, {pipeline_mode = #tpu.pipeline_mode<synchronous>, transform_indices = @transform_2, window_bounds = array<i64: 1, 32>}, {pipeline_mode = #tpu.pipeline_mode<synchronous>, transform_indices = @transform_3, window_bounds = array<i64: 32, 256>}, {pipeline_mode = #tpu.pipeline_mode<synchronous>, transform_indices = @transform_4, window_bounds = array<i64: 1, 256>}, {pipeline_mode = #tpu.pipeline_mode<synchronous>, transform_indices = @transform_5, window_bounds = array<i64: 256, 64>}, {pipeline_mode = #tpu.pipeline_mode<synchronous>, transform_indices = @transform_6, window_bounds = array<i64: 1, 64>}, {pipeline_mode = #tpu.pipeline_mode<synchronous>, transform_indices = @transform_7, window_bounds = array<i64: 64, 8>}, {pipeline_mode = #tpu.pipeline_mode<synchronous>, transform_indices = @transform_8, window_bounds = array<i64: 1, 8>}, {transform_indices = @transform_9, window_bounds = array<i64: 8, 8>}]} {
    %c0 = arith.constant 0 : index
    %c0_0 = arith.constant 0 : index
    %0 = vector.load %arg1[%c0, %c0_0] : memref<8x28xf32, #tpu.memory_space<vmem>>, vector<8x28xf32>
    %c0_1 = arith.constant 0 : index
    %c0_2 = arith.constant 0 : index
    %1 = vector.load %arg2[%c0_1, %c0_2] : memref<28x32xf32, #tpu.memory_space<vmem>>, vector<28x32xf32>
    %cst = arith.constant dense<0.000000e+00> : vector<8x32xf32>
    %2 = tpu.matmul %0, %1, %cst {dimension_numbers = #tpu.dot_dimension_numbers<[1], [0], [0], [1], [0, 0, 1, 1], [], []>} : vector<8x28xf32>, vector<28x32xf32>, vector<8x32xf32> -> vector<8x32xf32>
    %c0_3 = arith.constant 0 : index
    %c0_4 = arith.constant 0 : index
    %3 = vector.load %arg3[%c0_3, %c0_4] : memref<1x32xf32, #tpu.memory_space<vmem>>, vector<1x32xf32>
    %4 = vector.broadcast %3 : vector<1x32xf32> to vector<8x32xf32>
    %5 = arith.addf %2, %4 : vector<8x32xf32>
    %cst_5 = arith.constant 0.000000e+00 : f32
    %6 = vector.broadcast %cst_5 : f32 to vector<8x32xf32>
    %7 = arith.maximumf %5, %6 : vector<8x32xf32>
    %c0_6 = arith.constant 0 : index
    %c0_7 = arith.constant 0 : index
    %8 = vector.load %arg4[%c0_6, %c0_7] : memref<32x256xf32, #tpu.memory_space<vmem>>, vector<32x256xf32>
    %cst_8 = arith.constant dense<0.000000e+00> : vector<8x256xf32>
    %9 = tpu.matmul %7, %8, %cst_8 {dimension_numbers = #tpu.dot_dimension_numbers<[1], [0], [0], [1], [0, 0, 1, 1], [], []>} : vector<8x32xf32>, vector<32x256xf32>, vector<8x256xf32> -> vector<8x256xf32>
    %c0_9 = arith.constant 0 : index
    %c0_10 = arith.constant 0 : index
    %10 = vector.load %arg5[%c0_9, %c0_10] : memref<1x256xf32, #tpu.memory_space<vmem>>, vector<1x256xf32>
    %11 = vector.broadcast %10 : vector<1x256xf32> to vector<8x256xf32>
    %12 = arith.addf %9, %11 : vector<8x256xf32>
    %cst_11 = arith.constant 0.000000e+00 : f32
    %13 = vector.broadcast %cst_11 : f32 to vector<8x256xf32>
    %14 = arith.maximumf %12, %13 : vector<8x256xf32>
    %c0_12 = arith.constant 0 : index
    %c0_13 = arith.constant 0 : index
    %15 = vector.load %arg6[%c0_12, %c0_13] : memref<256x64xf32, #tpu.memory_space<vmem>>, vector<256x64xf32>
    %cst_14 = arith.constant dense<0.000000e+00> : vector<8x64xf32>
    %16 = tpu.matmul %14, %15, %cst_14 {dimension_numbers = #tpu.dot_dimension_numbers<[1], [0], [0], [1], [0, 0, 1, 1], [], []>} : vector<8x256xf32>, vector<256x64xf32>, vector<8x64xf32> -> vector<8x64xf32>
    %c0_15 = arith.constant 0 : index
    %c0_16 = arith.constant 0 : index
    %17 = vector.load %arg7[%c0_15, %c0_16] : memref<1x64xf32, #tpu.memory_space<vmem>>, vector<1x64xf32>
    %18 = vector.broadcast %17 : vector<1x64xf32> to vector<8x64xf32>
    %19 = arith.addf %16, %18 : vector<8x64xf32>
    %cst_17 = arith.constant 0.000000e+00 : f32
    %20 = vector.broadcast %cst_17 : f32 to vector<8x64xf32>
    %21 = arith.maximumf %19, %20 : vector<8x64xf32>
    %c0_18 = arith.constant 0 : index
    %c0_19 = arith.constant 0 : index
    %22 = vector.load %arg8[%c0_18, %c0_19] : memref<64x8xf32, #tpu.memory_space<vmem>>, vector<64x8xf32>
    %cst_20 = arith.constant dense<0.000000e+00> : vector<8x8xf32>
    %23 = tpu.matmul %21, %22, %cst_20 {dimension_numbers = #tpu.dot_dimension_numbers<[1], [0], [0], [1], [0, 0, 1, 1], [], []>} : vector<8x64xf32>, vector<64x8xf32>, vector<8x8xf32> -> vector<8x8xf32>
    %c0_21 = arith.constant 0 : index
    %c0_22 = arith.constant 0 : index
    %24 = vector.load %arg9[%c0_21, %c0_22] : memref<1x8xf32, #tpu.memory_space<vmem>>, vector<1x8xf32>
    %25 = vector.broadcast %24 : vector<1x8xf32> to vector<8x8xf32>
    %26 = arith.addf %23, %25 : vector<8x8xf32>
    %c0_23 = arith.constant 0 : index
    %c0_24 = arith.constant 0 : index
    %27 = vector.load %arg10[%c0_23, %c0_24] : memref<8x8xf32, #tpu.memory_space<vmem>>, vector<8x8xf32>
    tpu.vector_store %arg10[%c0_23, %c0_24], %26 {strides = array<i32>} : memref<8x8xf32, #tpu.memory_space<vmem>>, vector<8x8xf32>,
    return
  }
  func.func @transform_0(%arg0: i32) -> (i32, i32) {
    %c0_i32 = arith.constant 0 : i32
    %c0_i32_0 = arith.constant 0 : i32
    return %arg0, %c0_i32 : i32, i32
  }
  func.func @transform_1(%arg0: i32) -> (i32, i32) {
    %c0_i32 = arith.constant 0 : i32
    %c0_i32_0 = arith.constant 0 : i32
    %c0_i32_1 = arith.constant 0 : i32
    return %c0_i32, %c0_i32_0 : i32, i32
  }
  func.func @transform_2(%arg0: i32) -> (i32, i32) {
    %c0_i32 = arith.constant 0 : i32
    %c0_i32_0 = arith.constant 0 : i32
    %c0_i32_1 = arith.constant 0 : i32
    return %c0_i32, %c0_i32_0 : i32, i32
  }
  func.func @transform_3(%arg0: i32) -> (i32, i32) {
    %c0_i32 = arith.constant 0 : i32
    %c0_i32_0 = arith.constant 0 : i32
    %c0_i32_1 = arith.constant 0 : i32
    return %c0_i32, %c0_i32_0 : i32, i32
  }
  func.func @transform_4(%arg0: i32) -> (i32, i32) {
    %c0_i32 = arith.constant 0 : i32
    %c0_i32_0 = arith.constant 0 : i32
    %c0_i32_1 = arith.constant 0 : i32
    return %c0_i32, %c0_i32_0 : i32, i32
  }
  func.func @transform_5(%arg0: i32) -> (i32, i32) {
    %c0_i32 = arith.constant 0 : i32
    %c0_i32_0 = arith.constant 0 : i32
    %c0_i32_1 = arith.constant 0 : i32
    return %c0_i32, %c0_i32_0 : i32, i32
  }
  func.func @transform_6(%arg0: i32) -> (i32, i32) {
    %c0_i32 = arith.constant 0 : i32
    %c0_i32_0 = arith.constant 0 : i32
    %c0_i32_1 = arith.constant 0 : i32
    return %c0_i32, %c0_i32_0 : i32, i32
  }
  func.func @transform_7(%arg0: i32) -> (i32, i32) {
    %c0_i32 = arith.constant 0 : i32
    %c0_i32_0 = arith.constant 0 : i32
    %c0_i32_1 = arith.constant 0 : i32
    return %c0_i32, %c0_i32_0 : i32, i32
  }
  func.func @transform_8(%arg0: i32) -> (i32, i32) {
    %c0_i32 = arith.constant 0 : i32
    %c0_i32_0 = arith.constant 0 : i32
    %c0_i32_1 = arith.constant 0 : i32
    return %c0_i32, %c0_i32_0 : i32, i32
  }
  func.func @transform_9(%arg0: i32) -> (i32, i32) {
    %c0_i32 = arith.constant 0 : i32
    %c0_i32_0 = arith.constant 0 : i32
    return %arg0, %c0_i32 : i32, i32
  }
}

</mosaic_0001>

<bundles_post_ra>
// kernel: single_model_forward.1
= control target key start
LH: loop header
LB: loop body
LE: loop exit
PB: predicated region body
PF: predicated region fallthrough
CT: control target
= control target key end

     0   :  { %vm48_vm0 = vcmask 1043456   ;;  %v513_v0 = vmov 0.0   ;;  %vm514_vm1 = vmmov 0   ;;  %vm44_vm2 = vcmask 228352   ;;  %s756_s1 = inlined_call_operand.vmem [shape: f32[28,32], index: 1, kind: input, shape index: {}]   ;;  %s757_s0 = inlined_call_operand.vmem [shape: f32[8,28], index: 0, kind: input, shape index: {}]   ;;  %s758_s3 = inlined_call_operand.vmem [shape: f32[32,256], index: 3, kind: input, shape index: {}]   ;;  %s759_s5 = inlined_call_operand.vmem [shape: f32[256,64], index: 5, kind: input, shape index: {}]   ;;  %s760_s2 = inlined_call_operand.vmem [shape: f32[1,32], index: 2, kind: input, shape index: {}]   ;;  %s761_s7 = inlined_call_operand.vmem [shape: f32[64,8], index: 7, kind: input, shape index: {}]   ;;  %s762_s4 = inlined_call_operand.vmem [shape: f32[1,256], index: 4, kind: input, shape index: {}]   ;;  %s763_s6 = inlined_call_operand.vmem [shape: f32[1,64], index: 6, kind: input, shape index: {}]   ;;  %s764_s8 = inlined_call_operand.vmem [shape: f32[1,8], index: 8, kind: input, shape index: {}]   ;;  %s765_s9 = inlined_call_operand.vmem [shape: f32[8,8], index: 9, kind: output, shape index: {}]  }
   0x1   :  { %481 = vmatprep.subr.mxu1 %v513_v0  ;;  %v36_v1 = vld [vmem:[%s756_s1 + $0x18] sm:$0xf]  ;;  %v35_v2 = vld [vmem:[%s756_s1 + $0x10] sm:$0xff]  ;;  %489 = vmatprep.mubr.msk.f32.mxu1 %vm514_vm1, %v513_v0  ;;  %v34_v3 = vld [vmem:[%s756_s1 + $0x8] sm:$0xff]  ;;  %vm143_vm3 = vcmask 261120   ;;  %v133_v54 = vlaneseq  ;;  %vm345_vm4 = vcmask 523264  }
   0x2   :  { %482 = vmatpush3.msk.msra.mxu1 %vm48_vm0, %v36_v1  ;;  %v33_v4 = vld [vmem:[%s756_s1] sm:$0xff]  ;;  %v130_v6 = vld [vmem:[%s758_s3 + $0x38] sm:$0xff]  ;;  %v129_v7 = vld [vmem:[%s758_s3 + $0x30] sm:$0xff]  ;;  %vm419_vm5 = vcmask 64512  }
   0x3   :  { %483 = vmatprep.subr.mxu1 %v513_v0  ;;  %v32_v5 = vld [vmem:[%s757_s0] sm:$0xff]  ;;  %v128_v8 = vld [vmem:[%s758_s3 + $0x28] sm:$0xff]  ;;  %v126_v10 = vld [vmem:[%s758_s3 + $0x18] sm:$0xff]  ;;  %v134_v55 = vshrl.u32 %v133_v54, 7 }
   0x4   :  { %484 = vmatpush3.msra.mxu1 %v35_v2  ;;  %v127_v9 = vld [vmem:[%s758_s3 + $0x20] sm:$0xff]  ;;  %v125_v11 = vld [vmem:[%s758_s3 + $0x10] sm:$0xff]  ;;  %v124_v12 = vld [vmem:[%s758_s3 + $0x8] sm:$0xff] }
   0x5   :  { %485 = vmatprep.subr.mxu1 %v513_v0  ;;  %v123_v13 = vld [vmem:[%s758_s3] sm:$0xff]  ;;  %v251_v14 = vld [vmem:[%s759_s5 + $0xf8] sm:$0xff]  ;;  %v250_v16 = vld [vmem:[%s759_s5 + $0xf0] sm:$0xff]  ;;  %v135_v56 = vsub.s32 0, %v134_v55  ;;  %v139_v58 = vsub.s32 1, %v134_v55 }
   0x6   :  { %486 = vmatpush3.msra.mxu1 %v34_v3  ;;  %v235_v15 = vld [vmem:[%s759_s5 + $0x78] sm:$0xff]  ;;  %437 = vmatprep.subr.mxu0 %v251_v14  ;;  %v234_v17 = vld [vmem:[%s759_s5 + $0x70] sm:$0xff]  ;;  %v249_v18 = vld [vmem:[%s759_s5 + $0xe8] sm:$0xff] }
   0x7   :  { %487 = vmatprep.subr.mxu1 %v513_v0  ;;  %438 = vmatpush3.msra.mxu0 %v235_v15  ;;  %v233_v19 = vld [vmem:[%s759_s5 + $0x68] sm:$0xff]  ;;  %v248_v20 = vld [vmem:[%s759_s5 + $0xe0] sm:$0xff]  ;;  %v247_v22 = vld [vmem:[%s759_s5 + $0xd8] sm:$0xff] }
   0x8   :  { %488 = vmatpush3.msra.mxu1 %v33_v4  ;;  %439 = vmatprep.subr.mxu0 %v250_v16  ;;  %v232_v21 = vld [vmem:[%s759_s5 + $0x60] sm:$0xff]  ;;  %v231_v23 = vld [vmem:[%s759_s5 + $0x58] sm:$0xff]  ;;  %v246_v24 = vld [vmem:[%s759_s5 + $0xd0] sm:$0xff] }
   0x9   :  { %490 = vmatmul.mubr.msk.f32.vlgmr.msra.gmra.mxu1 %vm44_vm2, %v32_v5  ;;  %171 = vmatprep.subr.mxu1 %v130_v6  ;;  %v230_v25 = vld [vmem:[%s759_s5 + $0x50] sm:$0xff]  ;;  %v245_v26 = vld [vmem:[%s759_s5 + $0xc8] sm:$0xff]  ;;  %v244_v28 = vld [vmem:[%s759_s5 + $0xc0] sm:$0xff] }
   0xa   :  { %172 = vmatpush1.msra.mxu1 %v129_v7  ;;  %211 = vmatprep.mubr.f32.mxu1 %v513_v0  ;;  %v229_v27 = vld [vmem:[%s759_s5 + $0x48] sm:$0xff]  ;;  %v228_v29 = vld [vmem:[%s759_s5 + $0x40] sm:$0xff]  ;;  %v243_v30 = vld [vmem:[%s759_s5 + $0xb8] sm:$0xff] }
   0xb   :  { %173 = vmatprep.subr.mxu1 %v128_v8  ;;  %440 = vmatpush3.msra.mxu0 %v234_v17  ;;  %v227_v31 = vld [vmem:[%s759_s5 + $0x38] sm:$0xff]  ;;  %v242_v32 = vld [vmem:[%s759_s5 + $0xb0] sm:$0xff]  ;;  %v241_v34 = vld [vmem:[%s759_s5 + $0xa8] sm:$0xff] }
   0xc   :  { %174 = vmatpush1.msra.mxu1 %v127_v9  ;;  %441 = vmatprep.subr.mxu0 %v249_v18  ;;  %v226_v33 = vld [vmem:[%s759_s5 + $0x30] sm:$0xff]  ;;  %v225_v35 = vld [vmem:[%s759_s5 + $0x28] sm:$0xff]  ;;  %v240_v36 = vld [vmem:[%s759_s5 + $0xa0] sm:$0xff] }
   0xd   :  { %175 = vmatprep.subr.mxu1 %v126_v10  ;;  %442 = vmatpush3.msra.mxu0 %v233_v19  ;;  %v224_v37 = vld [vmem:[%s759_s5 + $0x20] sm:$0xff]  ;;  %v239_v43 = vld [vmem:[%s759_s5 + $0x98] sm:$0xff]  ;;  %v238_v45 = vld [vmem:[%s759_s5 + $0x90] sm:$0xff] }
   0xe   :  { %176 = vmatpush1.msra.mxu1 %v125_v11  ;;  %443 = vmatprep.subr.mxu0 %v248_v20  ;;  %v425_v38 = vld [vmem:[%s760_s2] ss:$0 sm:$0xff]  ;;  %v223_v44 = vld [vmem:[%s759_s5 + $0x18] sm:$0xff]  ;;  %v222_v46 = vld [vmem:[%s759_s5 + $0x10] sm:$0xff] }
   0xf   :  { %177 = vmatprep.subr.mxu1 %v124_v12  ;;  %444 = vmatpush3.msra.mxu0 %v232_v21  ;;  %v237_v47 = vld [vmem:[%s759_s5 + $0x88] sm:$0xff]  ;;  %v236_v49 = vld [vmem:[%s759_s5 + $0x80] sm:$0xff]  ;;  %v337_v51 = vld [vmem:[%s761_s7 + $0x38] sm:$0xff] }
  0x10   :  { %178 = vmatpush1.msra.mxu1 %v123_v13  ;;  %445 = vmatprep.subr.mxu0 %v247_v22  ;;  %v221_v48 = vld [vmem:[%s759_s5 + $0x8] sm:$0xff]  ;;  %v220_v50 = vld [vmem:[%s759_s5] sm:$0xff]  ;;  %v336_v52 = vld [vmem:[%s761_s7 + $0x30] sm:$0xff] }
  0x11   :  { %492 = vmatprep.subr.mxu1 %v513_v0  ;;  %446 = vmatpush3.msra.mxu0 %v231_v23  ;;  %v335_v53 = vld [vmem:[%s761_s7 + $0x28] sm:$0xff]  ;;  %v131_v57 = vld [vmem:[%s762_s4] sm:$0x3]  ;;  %v333_v5 = vld [vmem:[%s761_s7 + $0x18] sm:$0xff] }
  0x12   :  { %447 = vmatprep.subr.mxu0 %v246_v24  ;;  %v136_v59 = vrot.slane %v131_v57, %v135_v56  ;;  %v140_v60 = vrot.slane %v131_v57, %v139_v58  ;;  %v334_v4 = vld [vmem:[%s761_s7 + $0x20] sm:$0xff]  ;;  %v332_v6 = vld [vmem:[%s761_s7 + $0x10] sm:$0xff]  ;;  %v331_v7 = vld [vmem:[%s761_s7 + $0x8] sm:$0xff] }
  0x13   :  { %448 = vmatpush3.msra.mxu0 %v230_v25  ;;  %v330_v8 = vld [vmem:[%s761_s7] sm:$0xff] }
  0x14   :  { %449 = vmatprep.subr.mxu0 %v245_v26  ;;  %v429_v10 = vld [vmem:[%s763_s6] ss:$0 sm:$0xff] }
  0x15   :  { %450 = vmatpush3.msra.mxu0 %v229_v27 }
  0x16   :  { %451 = vmatprep.subr.mxu0 %v244_v28 }
  0x17   :  { %452 = vmatpush3.msra.mxu0 %v228_v29 }
  0x18   :  { %453 = vmatprep.subr.mxu0 %v243_v30 }
  0x19   :  { %454 = vmatpush3.msra.mxu0 %v227_v31 }
  0x1a   :  { %455 = vmatprep.subr.mxu0 %v242_v32 }
  0x1b   :  { %456 = vmatpush3.msra.mxu0 %v226_v33 }
  0x1c   :  { %457 = vmatprep.subr.mxu0 %v241_v34 }
  0x1d   :  { %458 = vmatpush3.msra.mxu0 %v225_v35 }
  0x1e   :  { %459 = vmatprep.subr.mxu0 %v240_v36 }
  0x1f   :  { %460 = vmatpush3.msra.mxu0 %v224_v37 }
  0x20   :  { %461 = vmatprep.subr.mxu0 %v239_v43 }
  0x21   :  { %462 = vmatpush3.msra.mxu0 %v223_v44 }
  0x22   :  { %463 = vmatprep.subr.mxu0 %v238_v45 }
  0x23   :  { %464 = vmatpush3.msra.mxu0 %v222_v46 }
  0x24   :  { %465 = vmatprep.subr.mxu0 %v237_v47 }
  0x25   :  { %466 = vmatpush3.msra.mxu0 %v221_v48 }
  0x26   :  { %467 = vmatprep.subr.mxu0 %v236_v49 }
  0x27   :  { %468 = vmatpush3.msra.mxu0 %v220_v50 }
  0xc9   :  { %v118_v39 = vpop.f32.mrf.mxu1 }
  0xca   :  { %v119_v40 = vadd.f32 %v425_v38, %v118_v39 }
  0xcb   :  { %v491_v41 = vpop.f32.mrf.mxu1 }
  0xcc   :  { %v122_v42 = vmax.f32 %v119_v40, 0.0 }
  0xce   :  { %428 = vmatmul.mubr.msk.f32.vlgmr.msra.gmra.mxu1 %vm143_vm3, %v122_v42 }
  0xcf   :  { %508 = vmatprep.mubr.msk.f32.mxu1 %vm514_vm1, %v513_v0  ;;  %493 = vmatpush3.msra.mxu1 %v337_v51 }
  0xd0   :  { %494 = vmatprep.subr.mxu1 %v513_v0 }
  0xd1   :  { %495 = vmatpush3.msra.mxu1 %v336_v52 }
  0xd2   :  { %496 = vmatprep.subr.mxu1 %v513_v0 }
  0xd3   :  { %497 = vmatpush3.msra.mxu1 %v335_v53 }
  0xd4   :  { %498 = vmatprep.subr.mxu1 %v513_v0 }
  0xd5   :  { %499 = vmatpush3.msra.mxu1 %v334_v4 }
  0xd6   :  { %500 = vmatprep.subr.mxu1 %v513_v0 }
  0xd7   :  { %501 = vmatpush3.msra.mxu1 %v333_v5 }
  0xd8   :  { %502 = vmatprep.subr.mxu1 %v513_v0 }
  0xd9   :  { %503 = vmatpush3.msra.mxu1 %v332_v6 }
  0xda   :  { %504 = vmatprep.subr.mxu1 %v513_v0 }
  0xdb   :  { %505 = vmatpush3.msra.mxu1 %v331_v7 }
  0xdc   :  { %506 = vmatprep.subr.mxu1 %v513_v0  ;;  %v430_v0 = vld [vmem:[%s764_s8] ss:$0 sm:$0xff] }
  0xdd   :  { %507 = vmatpush3.msra.mxu1 %v330_v8 }
 0x18e   :  { %v213_v61 = vpop.f32.mrf.mxu1 }
 0x18f   :  { %v214_v62 = vadd.f32 %v213_v61, %v136_v59 }
 0x190   :  { %v215_v63 = vpop.f32.mrf.mxu1 }
 0x191   :  { %v216_v1 = vadd.f32 %v215_v63, %v140_v60  ;;  %v218_v3 = vmax.f32 %v214_v62, 0.0 }
 0x193   :  { %v219_v2 = vmax.f32 %v216_v1, 0.0 }
 0x195   :  { %323 = vmatprep.mubr.f32.mxu0 %v219_v2 }
 0x196   :  { %324 = vmatmul.mubr.f32.vlgmr.msra.gmra.mxu0 %v218_v3 }
 0x256   :  { %v469_v9 = vpop.f32.mrf.mxu0 }
 0x258   :  { %v470_v11 = vpop.f32.mrf.mxu0 }
 0x259   :  { %v471_v12 = vadd.f32 %v470_v11, %v469_v9 }
 0x25b   :  { %v326_v13 = vadd.f32 %v471_v12, %v429_v10 }
 0x25d   :  { %v329_v14 = vmax.f32 %v326_v13, 0.0 }
 0x25f   :  { %509 = vmatmul.mubr.msk.f32.vlgmr.msra.gmra.mxu1 %vm345_vm4, %v329_v14 }
 0x31f   :  { %v415_v15 = vpop.f32.mrf.mxu1 }
 0x320   :  { %v416_v16 = vadd.f32 %v430_v0, %v415_v15 }
 0x321   :  { %v510_v17 = vpop.f32.mrf.mxu1 }
 0x322   :  { %420 = vst.msk [vmem:[%s765_s9] sm:$0xff] %vm419_vm5, %v416_v16 }

</bundles_post_ra>
